<compile_context>
chip_gen: v6e
topology: v6e:2x2x1
jax: 0.10.0
libtpu: 0.0.40
codegen_flags: <defaults>
</compile_context>

<pallas_src>
import functools

import jax
import jax.numpy as jnp
from jax.experimental import pallas as pl
from jax.experimental.pallas import tpu as pltpu

NEG_SLOPE = 0.01          # nn.LeakyReLU default inside GNNLayer
STATIC_EFEATS = 2
BN_EPS = 1e-5


def _round_up(x, m):
    return ((x + m - 1) // m) * m


# ----------------------------------------------------------------------------
# Pallas kernel: one GNN layer (NNConv, mean aggregation), tiled over edges.
# Grid = (batch "parallel", edge-tile "arbitrary").  The [N_pad, f_out] node
# accumulator lives in the output block, resident across the edge axis.
# ----------------------------------------------------------------------------
def gnn_layer_kernel(*refs, n_pad, add_residual):
    if add_residual:
        (src_ref, dst_ref, e_ref, v_ref, invdeg_ref, vres_ref,
         w1_ref, b1_ref, wroot_ref, bias_ref, r_ref, g_ref, out_ref) = refs
    else:
        (src_ref, dst_ref, e_ref, v_ref, invdeg_ref,
         w1_ref, b1_ref, wroot_ref, bias_ref, r_ref, g_ref, out_ref) = refs
        vres_ref = None

    e_idx = pl.program_id(1)
    tile_e = src_ref.shape[1]

    @pl.when(e_idx == 0)
    def _():
        out_ref[0] = jnp.zeros(out_ref.shape[1:], out_ref.dtype)

    v = v_ref[0]                                   # [N_pad, f_in]  (resident)
    e = e_ref[0]                                   # [tile_E, 2]
    src = src_ref[0]                               # [tile_E, 1]    int32
    dst = dst_ref[0]                               # [1, tile_E]    int32

    # Edge net: Linear (BatchNorm already folded) as two VPU broadcast FMAs
    # (K=2 is far too shallow to be worth an MXU pass), then Tanh on the EUP.
    we = jnp.tanh(e[:, 0:1] * w1_ref[0:1, :]
                  + e[:, 1:2] * w1_ref[1:2, :]
                  + b1_ref[...])                   # [tile_E, f_in*f_out]

    # Gather source-node rows: per-tile 0/1 mask built from iota (no dense
    # [E, N] tensor anywhere in HBM), narrow (f_in-wide) MXU gather.
    src_onehot = (src == jax.lax.broadcasted_iota(
        jnp.int32, (tile_e, n_pad), 1)).astype(jnp.float32)          # [tile_E, N_pad]
    x_src = jnp.dot(src_onehot, v, preferred_element_type=jnp.float32)  # [tile_E, f_in]

    # Lane-dense replicate, per-edge weighting, grouped sum over f_in.
    x_rep = jnp.dot(x_src, r_ref[...],
                    preferred_element_type=jnp.float32)              # [tile_E, f_in*f_out]
    msg = jnp.dot(x_rep * we, g_ref[...],
                  preferred_element_type=jnp.float32)                # [tile_E, f_out]

    # Scatter-add into the node accumulator: 0/1-transpose matmul built
    # directly in [N_pad, tile_E] layout (no in-kernel transpose).  Padded
    # edges carry dst == n_pad, so their one-hot row is all zero.
    dst_onehot_t = (dst == jax.lax.broadcasted_iota(
        jnp.int32, (n_pad, tile_e), 0)).astype(jnp.float32)          # [N_pad, tile_E]
    out_ref[0] = out_ref[0] + jnp.dot(dst_onehot_t, msg,
                                      preferred_element_type=jnp.float32)

    # Finalize after the edge sweep: mean, root weight, bias, LeakyReLU
    # (+ the block residual on the last layer).
    @pl.when(e_idx == pl.num_programs(1) - 1)
    def _():
        agg = out_ref[0] * invdeg_ref[0]
        res = agg + jnp.dot(v, wroot_ref[...],
                            preferred_element_type=jnp.float32) + bias_ref[...]
        res = jnp.where(res >= 0.0, res, NEG_SLOPE * res)
        if add_residual:
            res = res + vres_ref[0]
        out_ref[0] = res


# ----------------------------------------------------------------------------
# Per-layer launch: grid, specs, cost estimate, VMEM budget
# ----------------------------------------------------------------------------
def _vmem_limit_bytes(n_pad, tile_e, f_in, f_out, add_residual):
    d = f_in * f_out
    edge = 2 * 4 * tile_e * 4                                   # src+dst+e_stat, double buffered
    node = 2 * 4 * n_pad * (f_in + 1 + f_out + (f_out if add_residual else 0))
    par = 2 * 4 * (3 * d + f_in * f_out + f_out + f_in * d + d * f_out)
    live = 4 * (2 * tile_e * n_pad + 3 * tile_e * d + 2 * n_pad * f_out)
    total = edge + node + par + live
    return int(min(64 * 1024 * 1024, max(4 * 1024 * 1024, 2 * total)))


def _cost_estimate(bsz, e_pad, n_pad, f_in, f_out, tile_e):
    d = f_in * f_out
    n_tiles = e_pad // tile_e
    flops = bsz * (n_tiles * 2 * tile_e
                   * (n_pad * f_in + f_in * d + d * f_out + n_pad * f_out)
                   + 2 * n_pad * f_in * f_out)
    transcend = bsz * e_pad * d
    bytes_accessed = 4 * bsz * (e_pad * 4 + n_pad * (f_in + 1 + 2 * f_out)) \
        + 4 * (3 * d + f_in * f_out + f_out + f_in * d + d * f_out)
    return pl.CostEstimate(flops=flops, transcendentals=transcend,
                           bytes_accessed=bytes_accessed)


def _run_layer(x, vres, src_col, dst_row, e_stat, invdeg, params,
               f_in, f_out, tile_e, add_residual):
    bsz, n_pad, _ = x.shape
    e_pad = src_col.shape[1]
    num_e_tiles = e_pad // tile_e

    w1, b1, wroot, bias = params
    # Constant replicate / group-sum matrices (exact 0/1).
    r_mat = jnp.repeat(jnp.eye(f_in, dtype=jnp.float32), f_out, axis=1)   # [f_in, f_in*f_out]
    g_mat = jnp.tile(jnp.eye(f_out, dtype=jnp.float32), (f_in, 1))        # [f_in*f_out, f_out]

    in_arrays = [src_col, dst_row, e_stat, x, invdeg]
    in_specs = [
        pl.BlockSpec((1, tile_e, 1), lambda b, e: (b, e, 0)),                  # src (col layout)
        pl.BlockSpec((1, 1, tile_e), lambda b, e: (b, 0, e)),                  # dst (row layout)
        pl.BlockSpec((1, tile_e, STATIC_EFEATS), lambda b, e: (b, e, 0)),      # e_static
        pl.BlockSpec((1, n_pad, f_in), lambda b, e: (b, 0, 0)),                # node feats (resident)
        pl.BlockSpec((1, n_pad, 1), lambda b, e: (b, 0, 0)),                   # 1/in-degree
    ]
    if add_residual:
        in_arrays.append(vres)
        in_specs.append(pl.BlockSpec((1, n_pad, f_out), lambda b, e: (b, 0, 0)))
    param_arrays = [w1, b1, wroot, bias, r_mat, g_mat]
    in_arrays += param_arrays
    in_specs += [pl.BlockSpec(p.shape, lambda b, e: (0, 0)) for p in param_arrays]

    kernel = functools.partial(gnn_layer_kernel, n_pad=n_pad,
                               add_residual=add_residual)
    return pl.pallas_call(
        kernel,
        out_shape=jax.ShapeDtypeStruct((bsz, n_pad, f_out), jnp.float32),
        grid_spec=pltpu.PrefetchScalarGridSpec(
            num_scalar_prefetch=0,
            grid=(bsz, num_e_tiles),
            in_specs=in_specs,
            out_specs=pl.BlockSpec((1, n_pad, f_out), lambda b, e: (b, 0, 0)),
        ),
        compiler_params=pltpu.CompilerParams(
            dimension_semantics=("parallel", "arbitrary"),
            vmem_limit_bytes=_vmem_limit_bytes(n_pad, tile_e, f_in, f_out,
                                               add_residual),
        ),
        cost_estimate=_cost_estimate(bsz, e_pad, n_pad, f_in, f_out, tile_e),
    )(*in_arrays)


# ----------------------------------------------------------------------------
# Glue: GNNBlock.forward (dynamic_efeats='skip', euclidian/direction=False)
# for a batch of same-sized graphs (batch axis -> "parallel" grid axis).
# ----------------------------------------------------------------------------
def gnn_block_forward(v, edge_index, edge_attr, layer_params, feat_dims,
                      residual=True, tile_e=None):
    """v: [B, N, f0]; edge_index: [B, 2, E]; edge_attr: [B, E, >=2]."""
    if residual:
        assert feat_dims[0] == feat_dims[-1], "residual needs matching in/out dims"
    v = v.astype(jnp.float32)
    bsz, n, _ = v.shape
    e_cnt = edge_index.shape[-1]

    n_pad = _round_up(n, 8)
    if tile_e is None:
        tile_e = min(512, _round_up(e_cnt, 128))
    e_pad = _round_up(e_cnt, tile_e)
    pad_e = e_pad - e_cnt

    src = edge_index[:, 0, :].astype(jnp.int32)
    dst = edge_index[:, 1, :].astype(jnp.int32)

    # Padded edges: src -> 0 (harmless gather), dst -> n_pad (out of range =>
    # zero scatter row => no contribution to sums or means).
    src_col = jnp.pad(src, ((0, 0), (0, pad_e)))[:, :, None]
    dst_row = jnp.pad(dst, ((0, 0), (0, pad_e)), constant_values=n_pad)[:, None, :]

    # _get_edge_feat: only static edge features (euclidian/direction disabled).
    e_stat = edge_attr[:, :, :STATIC_EFEATS].astype(jnp.float32)
    e_stat = jnp.pad(e_stat, ((0, 0), (0, pad_e), (0, 0)))

    # mean-aggregation scale: 1/in-degree (0 for isolated & padded nodes).
    deg = jax.vmap(lambda d: jnp.zeros((n_pad,), jnp.float32).at[d].add(1.0))(dst)
    invdeg = jnp.where(deg > 0, 1.0 / jnp.maximum(deg, 1.0), 0.0)[:, :, None]

    x = jnp.pad(v, ((0, 0), (0, n_pad - n), (0, 0)))
    vres = x

    n_layers = len(feat_dims) - 1
    for li, ((w1, b1, bns, bnb, wroot, bias), (f_in, f_out)) in enumerate(
            zip(layer_params, zip(feat_dims[:-1], feat_dims[1:]))):
        # Fold eval-mode BatchNorm into the edge Linear (exact per-column).
        w1f = w1 * bns
        b1f = b1 * bns + bnb
        last = li == n_layers - 1
        x = _run_layer(x, vres if (residual and last) else None,
                       src_col, dst_row, e_stat, invdeg,
                       (w1f, b1f, wroot, bias), f_in, f_out, tile_e,
                       add_residual=residual and last)
    # TODO(synk): for very large N, replace the in-kernel iota one-hot
    # gather/scatter (O(E*N*f) MXU work, zero extra HBM) with a dst-sorted
    # segment accumulation / DMA row gather and tile the node accumulator.
    # TODO(synk): f_out of 8/16 keeps output stores lane-sparse; packing
    # several graphs along the feature axis would make them 128-lane dense.
    return x[:, :n, :]


# ----------------------------------------------------------------------------
# Deterministic parameter initialization (synthetic, per module __init__ shapes)
# ----------------------------------------------------------------------------
def init_layer_params(key, f_in, f_out):
    dim = f_in * f_out
    k1, k2, k3 = jax.random.split(key, 3)
    w1 = jax.random.normal(k1, (STATIC_EFEATS, dim), jnp.float32) * 0.5   # Linear weight^T
    b1 = jax.random.normal(k2, (1, dim), jnp.float32) * 0.1               # Linear bias
    # BatchNorm1d in eval mode, default stats (gamma=1, beta=0, mean=0, var=1)
    bns = jnp.full((1, dim), 1.0 / float(jnp.sqrt(1.0 + BN_EPS)), jnp.float32)
    bnb = jnp.zeros((1, dim), jnp.float32)
    wroot = jax.random.normal(k3, (f_in, f_out), jnp.float32) / float(jnp.sqrt(f_in))
    bias = jnp.zeros((1, f_out), jnp.float32)                             # NNConv bias init
    return (w1, b1, bns, bnb, wroot, bias)


# ----------------------------------------------------------------------------
# Pure-JAX reference (scatter/einsum formulation) for validation
# ----------------------------------------------------------------------------
def reference_block(v, edge_index, edge_attr, layer_params, residual=True):
    def single(vg, eig, eag):
        n = vg.shape[0]
        src, dst = eig[0], eig[1]
        e_static = eag[:, :STATIC_EFEATS].astype(jnp.float32)
        vres = vg.astype(jnp.float32)
        x = vres
        for (w1, b1, bns, bnb, wroot, bias) in layer_params:
            f_in, f_out = wroot.shape
            we = jnp.tanh((e_static @ w1 + b1) * bns + bnb)
            W = we.reshape(-1, f_in, f_out)
            msg = jnp.einsum('ei,eio->eo', x[src], W)
            summed = jnp.zeros((n, f_out), jnp.float32).at[dst].add(msg)
            cnt = jnp.zeros((n,), jnp.float32).at[dst].add(1.0)
            agg = summed / jnp.maximum(cnt, 1.0)[:, None]
            out = agg + x @ wroot + bias
            x = jnp.where(out >= 0.0, out, NEG_SLOPE * out)
        return x + vres if residual else x
    return jax.vmap(single)(v, edge_index, edge_attr)


if __name__ == "__main__":
    B, N, E = 2, 16, 40
    feat_dims = [8, 16, 8]          # -> 2 GNN layers; residual needs in == out

    key = jax.random.PRNGKey(0)
    kv, ke, ka, kp = jax.random.split(key, 4)
    v = jax.random.normal(kv, (B, N, feat_dims[0]), jnp.float32)
    edge_index = jax.random.randint(ke, (B, 2, E), 0, N)
    edge_attr = jax.random.normal(ka, (B, E, 3), jnp.float32)  # >= static_efeats cols

    layer_keys = jax.random.split(kp, len(feat_dims) - 1)
    layer_params = [
        init_layer_params(lk, fi, fo)
        for lk, (fi, fo) in zip(layer_keys, zip(feat_dims[:-1], feat_dims[1:]))
    ]

    out = gnn_block_forward(v, edge_index, edge_attr, layer_params,
                            feat_dims, residual=True)
    out = jax.block_until_ready(out)

    ref = reference_block(v, edge_index, edge_attr, layer_params, residual=True)
    assert out.shape == (B, N, feat_dims[-1])
    assert jnp.allclose(out, ref, rtol=2e-4, atol=2e-4), \
        "Pallas kernel mismatch vs reference"

    # TODO(synk): euclidian/direction edge-feature paths (l2_normalize of pos
    # differences) are not exercised since the default config disables them.
    print("KERNEL_OK")
</pallas_src>

<mosaic_0001>
module attributes {stable_mosaic.version = 11 : i64} {
  func.func @gnn_layer_kernel(%arg0: i32, %arg1: i32, %arg2: memref<1x128x1xi32, #tpu.memory_space<vmem>>, %arg3: memref<1x1x128xi32, #tpu.memory_space<vmem>>, %arg4: memref<1x128x2xf32, #tpu.memory_space<vmem>>, %arg5: memref<1x16x8xf32, #tpu.memory_space<vmem>>, %arg6: memref<1x16x1xf32, #tpu.memory_space<vmem>>, %arg7: memref<2x128xf32, #tpu.memory_space<vmem>>, %arg8: memref<1x128xf32, #tpu.memory_space<vmem>>, %arg9: memref<8x16xf32, #tpu.memory_space<vmem>>, %arg10: memref<1x16xf32, #tpu.memory_space<vmem>>, %arg11: memref<8x128xf32, #tpu.memory_space<vmem>>, %arg12: memref<128x16xf32, #tpu.memory_space<vmem>>, %arg13: memref<1x16x16xf32, #tpu.memory_space<vmem>>) attributes {dimension_semantics = [#tpu.dimension_semantics<parallel>, #tpu.dimension_semantics<arbitrary>], iteration_bounds = array<i64: 2, 1>, scalar_prefetch = 0 : i64, scratch_operands = 0 : i64, tpu.core_type = #tpu.core_type<tc>, window_params = [{transform_indices = @transform_0, window_bounds = array<i64: 1, 128, 1>}, {transform_indices = @transform_1, window_bounds = array<i64: 1, 1, 128>}, {transform_indices = @transform_2, window_bounds = array<i64: 1, 128, 2>}, {transform_indices = @transform_3, window_bounds = array<i64: 1, 16, 8>}, {transform_indices = @transform_4, window_bounds = array<i64: 1, 16, 1>}, {pipeline_mode = #tpu.pipeline_mode<synchronous>, transform_indices = @transform_5, window_bounds = array<i64: 2, 128>}, {pipeline_mode = #tpu.pipeline_mode<synchronous>, transform_indices = @transform_6, window_bounds = array<i64: 1, 128>}, {pipeline_mode = #tpu.pipeline_mode<synchronous>, transform_indices = @transform_7, window_bounds = array<i64: 8, 16>}, {pipeline_mode = #tpu.pipeline_mode<synchronous>, transform_indices = @transform_8, window_bounds = array<i64: 1, 16>}, {pipeline_mode = #tpu.pipeline_mode<synchronous>, transform_indices = @transform_9, window_bounds = array<i64: 8, 128>}, {pipeline_mode = #tpu.pipeline_mode<synchronous>, transform_indices = @transform_10, window_bounds = array<i64: 128, 16>}, {transform_indices = @transform_11, window_bounds = array<i64: 1, 16, 16>}]} {
    %c0_i32 = arith.constant 0 : i32
    %0 = arith.cmpi eq, %arg1, %c0_i32 : i32
    %1 = arith.extui %0 : i1 to i32
    %c0_i32_0 = arith.constant 0 : i32
    %2 = arith.cmpi ne, %1, %c0_i32_0 : i32
    scf.if %2 {
      %cst_32 = arith.constant 0.000000e+00 : f32
      %52 = vector.broadcast %cst_32 : f32 to vector<16x16xf32>
      %c0_33 = arith.constant 0 : index
      %c0_34 = arith.constant 0 : index
      %c0_35 = arith.constant 0 : index
      %53 = vector.load %arg13[%c0_33, %c0_34, %c0_35] : memref<1x16x16xf32, #tpu.memory_space<vmem>>, vector<1x16x16xf32>
      %54 = vector.shape_cast %53 : vector<1x16x16xf32> to vector<16x16xf32>
      %55 = vector.shape_cast %52 : vector<16x16xf32> to vector<1x16x16xf32>
      tpu.vector_store %arg13[%c0_33, %c0_34, %c0_35], %55 {strides = array<i32>} : memref<1x16x16xf32, #tpu.memory_space<vmem>>, vector<1x16x16xf32>,
    } else {
    }
    %c0 = arith.constant 0 : index
    %c0_1 = arith.constant 0 : index
    %c0_2 = arith.constant 0 : index
    %3 = vector.load %arg5[%c0, %c0_1, %c0_2] : memref<1x16x8xf32, #tpu.memory_space<vmem>>, vector<1x16x8xf32>
    %4 = vector.shape_cast %3 : vector<1x16x8xf32> to vector<16x8xf32>
    %c0_3 = arith.constant 0 : index
    %c0_4 = arith.constant 0 : index
    %c0_5 = arith.constant 0 : index
    %5 = vector.load %arg4[%c0_3, %c0_4, %c0_5] : memref<1x128x2xf32, #tpu.memory_space<vmem>>, vector<1x128x2xf32>
    %6 = vector.shape_cast %5 : vector<1x128x2xf32> to vector<128x2xf32>
    %c0_6 = arith.constant 0 : index
    %c0_7 = arith.constant 0 : index
    %c0_8 = arith.constant 0 : index
    %7 = vector.load %arg2[%c0_6, %c0_7, %c0_8] : memref<1x128x1xi32, #tpu.memory_space<vmem>>, vector<1x128x1xi32>
    %8 = vector.shape_cast %7 : vector<1x128x1xi32> to vector<128x1xi32>
    %c0_9 = arith.constant 0 : index
    %c0_10 = arith.constant 0 : index
    %c0_11 = arith.constant 0 : index
    %9 = vector.load %arg3[%c0_9, %c0_10, %c0_11] : memref<1x1x128xi32, #tpu.memory_space<vmem>>, vector<1x1x128xi32>
    %10 = vector.shape_cast %9 : vector<1x1x128xi32> to vector<1x128xi32>
    %11 = vector.extract_strided_slice %6 {offsets = [0, 0], sizes = [128, 1], strides = [1, 1]} : vector<128x2xf32> to vector<128x1xf32>
    %c0_12 = arith.constant 0 : index
    %c0_13 = arith.constant 0 : index
    %12 = vector.load %arg7[%c0_12, %c0_13] : memref<2x128xf32, #tpu.memory_space<vmem>>, vector<1x128xf32>
    %13 = vector.broadcast %11 : vector<128x1xf32> to vector<128x128xf32>
    %14 = vector.broadcast %12 : vector<1x128xf32> to vector<128x128xf32>
    %15 = arith.mulf %13, %14 : vector<128x128xf32>
    %16 = vector.extract_strided_slice %6 {offsets = [0, 1], sizes = [128, 1], strides = [1, 1]} : vector<128x2xf32> to vector<128x1xf32>
    %c1 = arith.constant 1 : index
    %c0_14 = arith.constant 0 : index
    %17 = vector.load %arg7[%c1, %c0_14] : memref<2x128xf32, #tpu.memory_space<vmem>>, vector<1x128xf32>
    %18 = vector.broadcast %16 : vector<128x1xf32> to vector<128x128xf32>
    %19 = vector.broadcast %17 : vector<1x128xf32> to vector<128x128xf32>
    %20 = arith.mulf %18, %19 : vector<128x128xf32>
    %21 = arith.addf %15, %20 : vector<128x128xf32>
    %c0_15 = arith.constant 0 : index
    %c0_16 = arith.constant 0 : index
    %22 = vector.load %arg8[%c0_15, %c0_16] : memref<1x128xf32, #tpu.memory_space<vmem>>, vector<1x128xf32>
    %23 = vector.broadcast %22 : vector<1x128xf32> to vector<128x128xf32>
    %24 = arith.addf %21, %23 : vector<128x128xf32>
    %25 = math.tanh %24 : vector<128x128xf32>
    %26 = tpu.iota {dimensions = array<i32: 1>} : vector<128x16xi32>
    %27 = vector.broadcast %8 : vector<128x1xi32> to vector<128x16xi32>
    %28 = arith.cmpi eq, %27, %26 : vector<128x16xi32>
    %29 = arith.extui %28 : vector<128x16xi1> to vector<128x16xi32>
    %30 = arith.sitofp %29 : vector<128x16xi32> to vector<128x16xf32>
    %cst = arith.constant dense<0.000000e+00> : vector<128x8xf32>
    %31 = tpu.matmul %30, %4, %cst {dimension_numbers = #tpu.dot_dimension_numbers<[1], [0], [0], [1], [0, 0, 1, 1], [], []>} : vector<128x16xf32>, vector<16x8xf32>, vector<128x8xf32> -> vector<128x8xf32>
    %c0_17 = arith.constant 0 : index
    %c0_18 = arith.constant 0 : index
    %32 = vector.load %arg11[%c0_17, %c0_18] : memref<8x128xf32, #tpu.memory_space<vmem>>, vector<8x128xf32>
    %cst_19 = arith.constant dense<0.000000e+00> : vector<128x128xf32>
    %33 = tpu.matmul %31, %32, %cst_19 {dimension_numbers = #tpu.dot_dimension_numbers<[1], [0], [0], [1], [0, 0, 1, 1], [], []>} : vector<128x8xf32>, vector<8x128xf32>, vector<128x128xf32> -> vector<128x128xf32>
    %34 = arith.mulf %33, %25 : vector<128x128xf32>
    %c0_20 = arith.constant 0 : index
    %c0_21 = arith.constant 0 : index
    %35 = vector.load %arg12[%c0_20, %c0_21] : memref<128x16xf32, #tpu.memory_space<vmem>>, vector<128x16xf32>
    %cst_22 = arith.constant dense<0.000000e+00> : vector<128x16xf32>
    %36 = tpu.matmul %34, %35, %cst_22 {dimension_numbers = #tpu.dot_dimension_numbers<[1], [0], [0], [1], [0, 0, 1, 1], [], []>} : vector<128x128xf32>, vector<128x16xf32>, vector<128x16xf32> -> vector<128x16xf32>
    %37 = tpu.iota {dimensions = array<i32: 0>} : vector<16x128xi32>
    %38 = vector.broadcast %10 : vector<1x128xi32> to vector<16x128xi32>
    %39 = arith.cmpi eq, %38, %37 : vector<16x128xi32>
    %40 = arith.extui %39 : vector<16x128xi1> to vector<16x128xi32>
    %41 = arith.sitofp %40 : vector<16x128xi32> to vector<16x128xf32>
    %c0_23 = arith.constant 0 : index
    %c0_24 = arith.constant 0 : index
    %c0_25 = arith.constant 0 : index
    %42 = vector.load %arg13[%c0_23, %c0_24, %c0_25] : memref<1x16x16xf32, #tpu.memory_space<vmem>>, vector<1x16x16xf32>
    %43 = vector.shape_cast %42 : vector<1x16x16xf32> to vector<16x16xf32>
    %cst_26 = arith.constant dense<0.000000e+00> : vector<16x16xf32>
    %44 = tpu.matmul %41, %36, %cst_26 {dimension_numbers = #tpu.dot_dimension_numbers<[1], [0], [0], [1], [0, 0, 1, 1], [], []>} : vector<16x128xf32>, vector<128x16xf32>, vector<16x16xf32> -> vector<16x16xf32>
    %45 = arith.addf %43, %44 : vector<16x16xf32>
    %c0_27 = arith.constant 0 : index
    %c0_28 = arith.constant 0 : index
    %c0_29 = arith.constant 0 : index
    %46 = vector.load %arg13[%c0_27, %c0_28, %c0_29] : memref<1x16x16xf32, #tpu.memory_space<vmem>>, vector<1x16x16xf32>
    %47 = vector.shape_cast %46 : vector<1x16x16xf32> to vector<16x16xf32>
    %48 = vector.shape_cast %45 : vector<16x16xf32> to vector<1x16x16xf32>
    tpu.vector_store %arg13[%c0_27, %c0_28, %c0_29], %48 {strides = array<i32>} : memref<1x16x16xf32, #tpu.memory_space<vmem>>, vector<1x16x16xf32>,
    %c0_i32_30 = arith.constant 0 : i32
    %49 = arith.cmpi eq, %arg1, %c0_i32_30 : i32
    %50 = arith.extui %49 : i1 to i32
    %c0_i32_31 = arith.constant 0 : i32
    %51 = arith.cmpi ne, %50, %c0_i32_31 : i32
    scf.if %51 {
      %c0_32 = arith.constant 0 : index
      %c0_33 = arith.constant 0 : index
      %c0_34 = arith.constant 0 : index
      %52 = vector.load %arg13[%c0_32, %c0_33, %c0_34] : memref<1x16x16xf32, #tpu.memory_space<vmem>>, vector<1x16x16xf32>
      %53 = vector.shape_cast %52 : vector<1x16x16xf32> to vector<16x16xf32>
      %c0_35 = arith.constant 0 : index
      %c0_36 = arith.constant 0 : index
      %c0_37 = arith.constant 0 : index
      %54 = vector.load %arg6[%c0_35, %c0_36, %c0_37] : memref<1x16x1xf32, #tpu.memory_space<vmem>>, vector<1x16x1xf32>
      %55 = vector.shape_cast %54 : vector<1x16x1xf32> to vector<16x1xf32>
      %56 = vector.broadcast %55 : vector<16x1xf32> to vector<16x16xf32>
      %57 = arith.mulf %53, %56 : vector<16x16xf32>
      %c0_38 = arith.constant 0 : index
      %c0_39 = arith.constant 0 : index
      %58 = vector.load %arg9[%c0_38, %c0_39] : memref<8x16xf32, #tpu.memory_space<vmem>>, vector<8x16xf32>
      %cst_40 = arith.constant dense<0.000000e+00> : vector<16x16xf32>
      %59 = tpu.matmul %4, %58, %cst_40 {dimension_numbers = #tpu.dot_dimension_numbers<[1], [0], [0], [1], [0, 0, 1, 1], [], []>} : vector<16x8xf32>, vector<8x16xf32>, vector<16x16xf32> -> vector<16x16xf32>
      %60 = arith.addf %57, %59 : vector<16x16xf32>
      %c0_41 = arith.constant 0 : index
      %c0_42 = arith.constant 0 : index
      %61 = vector.load %arg10[%c0_41, %c0_42] : memref<1x16xf32, #tpu.memory_space<vmem>>, vector<1x16xf32>
      %62 = vector.broadcast %61 : vector<1x16xf32> to vector<16x16xf32>
      %63 = arith.addf %60, %62 : vector<16x16xf32>
      %cst_43 = arith.constant 0.000000e+00 : f32
      %64 = vector.broadcast %cst_43 : f32 to vector<16x16xf32>
      %65 = arith.cmpf oge, %63, %64 : vector<16x16xf32>
      %cst_44 = arith.constant 0.00999999977 : f32
      %66 = vector.broadcast %cst_44 : f32 to vector<16x16xf32>
      %67 = arith.mulf %66, %63 : vector<16x16xf32>
      %68 = arith.select %65, %63, %67 : vector<16x16xi1>, vector<16x16xf32>
      %c0_45 = arith.constant 0 : index
      %c0_46 = arith.constant 0 : index
      %c0_47 = arith.constant 0 : index
      %69 = vector.load %arg13[%c0_45, %c0_46, %c0_47] : memref<1x16x16xf32, #tpu.memory_space<vmem>>, vector<1x16x16xf32>
      %70 = vector.shape_cast %69 : vector<1x16x16xf32> to vector<16x16xf32>
      %71 = vector.shape_cast %68 : vector<16x16xf32> to vector<1x16x16xf32>
      tpu.vector_store %arg13[%c0_45, %c0_46, %c0_47], %71 {strides = array<i32>} : memref<1x16x16xf32, #tpu.memory_space<vmem>>, vector<1x16x16xf32>,
    } else {
    }
    return
  }
  func.func @transform_0(%arg0: i32, %arg1: i32) -> (i32, i32, i32) {
    %c0_i32 = arith.constant 0 : i32
    %c0_i32_0 = arith.constant 0 : i32
    return %arg0, %arg1, %c0_i32 : i32, i32, i32
  }
  func.func @transform_1(%arg0: i32, %arg1: i32) -> (i32, i32, i32) {
    %c0_i32 = arith.constant 0 : i32
    %c0_i32_0 = arith.constant 0 : i32
    return %arg0, %c0_i32, %arg1 : i32, i32, i32
  }
  func.func @transform_2(%arg0: i32, %arg1: i32) -> (i32, i32, i32) {
    %c0_i32 = arith.constant 0 : i32
    %c0_i32_0 = arith.constant 0 : i32
    return %arg0, %arg1, %c0_i32 : i32, i32, i32
  }
  func.func @transform_3(%arg0: i32, %arg1: i32) -> (i32, i32, i32) {
    %c0_i32 = arith.constant 0 : i32
    %c0_i32_0 = arith.constant 0 : i32
    %c0_i32_1 = arith.constant 0 : i32
    return %arg0, %c0_i32, %c0_i32_0 : i32, i32, i32
  }
  func.func @transform_4(%arg0: i32, %arg1: i32) -> (i32, i32, i32) {
    %c0_i32 = arith.constant 0 : i32
    %c0_i32_0 = arith.constant 0 : i32
    %c0_i32_1 = arith.constant 0 : i32
    return %arg0, %c0_i32, %c0_i32_0 : i32, i32, i32
  }
  func.func @transform_5(%arg0: i32, %arg1: i32) -> (i32, i32) {
    %c0_i32 = arith.constant 0 : i32
    %c0_i32_0 = arith.constant 0 : i32
    %c0_i32_1 = arith.constant 0 : i32
    return %c0_i32, %c0_i32_0 : i32, i32
  }
  func.func @transform_6(%arg0: i32, %arg1: i32) -> (i32, i32) {
    %c0_i32 = arith.constant 0 : i32
    %c0_i32_0 = arith.constant 0 : i32
    %c0_i32_1 = arith.constant 0 : i32
    return %c0_i32, %c0_i32_0 : i32, i32
  }
  func.func @transform_7(%arg0: i32, %arg1: i32) -> (i32, i32) {
    %c0_i32 = arith.constant 0 : i32
    %c0_i32_0 = arith.constant 0 : i32
    %c0_i32_1 = arith.constant 0 : i32
    return %c0_i32, %c0_i32_0 : i32, i32
  }
  func.func @transform_8(%arg0: i32, %arg1: i32) -> (i32, i32) {
    %c0_i32 = arith.constant 0 : i32
    %c0_i32_0 = arith.constant 0 : i32
    %c0_i32_1 = arith.constant 0 : i32
    return %c0_i32, %c0_i32_0 : i32, i32
  }
  func.func @transform_9(%arg0: i32, %arg1: i32) -> (i32, i32) {
    %c0_i32 = arith.constant 0 : i32
    %c0_i32_0 = arith.constant 0 : i32
    %c0_i32_1 = arith.constant 0 : i32
    return %c0_i32, %c0_i32_0 : i32, i32
  }
  func.func @transform_10(%arg0: i32, %arg1: i32) -> (i32, i32) {
    %c0_i32 = arith.constant 0 : i32
    %c0_i32_0 = arith.constant 0 : i32
    %c0_i32_1 = arith.constant 0 : i32
    return %c0_i32, %c0_i32_0 : i32, i32
  }
  func.func @transform_11(%arg0: i32, %arg1: i32) -> (i32, i32, i32) {
    %c0_i32 = arith.constant 0 : i32
    %c0_i32_0 = arith.constant 0 : i32
    %c0_i32_1 = arith.constant 0 : i32
    return %arg0, %c0_i32, %c0_i32_0 : i32, i32, i32
  }
}

</mosaic_0001>

<bundles_post_ra>
// kernel: tpu_custom_call.1
= control target key start
LH: loop header
LB: loop body
LE: loop exit
PB: predicated region body
PF: predicated region fallthrough
CT: control target
= control target key end

     0   :  { %s2795_s0 = inlined_call_operand.vmem [shape: s32[2,128,1], index: 0, kind: input, shape index: {}]   ;;  %s2796_s1 = inlined_call_operand.vmem [shape: s32[2,1,128], index: 1, kind: input, shape index: {}]   ;;  %s2797_s2 = inlined_call_operand.vmem [shape: f32[2,128,2], index: 2, kind: input, shape index: {}]   ;;  %s2798_s3 = inlined_call_operand.vmem [shape: f32[2,16,8], index: 3, kind: input, shape index: {}]   ;;  %s2799_s4 = inlined_call_operand.vmem [shape: f32[2,16,1], index: 4, kind: input, shape index: {}]   ;;  %s2800_s5 = inlined_call_operand.vmem [shape: f32[2,128], index: 5, kind: input, shape index: {}]   ;;  %s2801_s6 = inlined_call_operand.vmem [shape: f32[1,128], index: 6, kind: input, shape index: {}]   ;;  %s2802_s7 = inlined_call_operand.vmem [shape: f32[8,16], index: 7, kind: input, shape index: {}]   ;;  %s2803_s8 = inlined_call_operand.vmem [shape: f32[1,16], index: 8, kind: input, shape index: {}]   ;;  %s2804_s9 = inlined_call_operand.vmem [shape: f32[8,128], index: 9, kind: input, shape index: {}]   ;;  %s2805_s10 = inlined_call_operand.vmem [shape: f32[128,16], index: 10, kind: input, shape index: {}]   ;;  %s2806_s11 = inlined_call_operand.hbm [shape: f32[2,16,16], index: 11, kind: output, shape index: {}]  }
   0x1   :  { %2807 = sst [smem:[#allocation5_spill]] %s2795_s0 }
   0x2   :  { %2808 = sst [smem:[#allocation6_spill]] %s2796_s1 }
   0x3   :  { %16 = vsyncpa [#allocation3], 0 }
   0x4   :  { %18 = vsyncpa [#allocation3 + $0x1], 0  ;;  %s2382_s17 = smov 0   ;;  %s2384_s18 = smov 0  }
   0x5   :  { %s2386_s19 = smov 0   ;;  %s2388_s20 = smov 0  }
   0x6   :  { %s2390_s21 = smov 0   ;;  %s2392_s22 = smov 0  }
   0x7 LB: > { %s1819_s23 = sadd.s32 4294967295, %s2313_s22   ;;  %s1820_s24 = sadd.s32 4294967294, %s2313_s22   ;;  %s2313_s22 = sphi %s2392_s22, %s24_s22   ;;  %s2309_s21 = sphi %s2390_s21, %s2817_s21   ;;  %s2305_s20 = sphi %s2388_s20, %s2816_s20   ;;  %s2301_s19 = sphi %s2386_s19, %s2815_s19   ;;  %s2297_s18 = sphi %s2384_s18, %s2814_s18   ;;  %s2293_s17 = sphi %s2382_s17, %s2813_s17  }
   0x8   : > { %s36_s25 = sadd.s32 1, %s2309_s21  ;;  %s305_s26 = sadd.s32 1, %s2301_s19 }
   0x9   : > { %p38_p0 = scmp.ge.s32.totalorder %s36_s25, 2  ;;  %p315_p1 = scmp.ne.s32.totalorder %s2301_s19, %s2297_s18 }
   0xa   : > { %p316_p2 = scmp.eq.s32.totalorder %s1819_s23, 1  ;;  %p321_p3 = scmp.ne.s32.totalorder %s2297_s18, %s2293_s17 }
   0xb   : > { %s2819_s25 = smov (%p38_p0, %s36_s25), 0  ;;  %p322_p5 = scmp.eq.s32.totalorder %s1820_s24, 1 }
   0xc   : > { %p2422_p4 = por %p316_p2, %p315_p1  ;;  %s302_s28 = ssub.s32 %s2309_s21, %s2819_s25 }
   0xd   : > { %p1823_p6 = scmp.ge.s32.totalorder %s2313_s22, 1  ;;  %p303_p7 = scmp.eq.s32.totalorder %s302_s28, 0 }
   0xe   : > { %p2429_p8 = por %p322_p5, %p321_p3  ;;  %p409_p9 = scmp.lt.s32.totalorder %s2313_s22, 3 }
   0xf   : > { %s2435_s30 = scalar_select %p303_p7, %s2301_s19, %s305_s26  }
  0x10   : > { %p410_p10 = pnand %p1823_p6, %p409_p9 }
  0x11   : > { %p479_p11 = scmp.lt.s32.totalorder (!%p410_p10), %s2305_s20, 1  ;;  %s2811_s0 = sld [smem:[#allocation5_spill]] (!%p410_p10) }
  0x12   : > { %413 = sbr.rel (%p410_p10) target bundleno = 1033 (0x409), region = 64  ;;  %s2812_s1 = sld [smem:[#allocation6_spill]] (!%p410_p10) }
  0x17   : > { %v2315_v0 = vmov 0   ;;  %s2441_s12 = scalar_select %p479_p11, %s2305_s20, 1  ;;  %v2316_v20 = vmov 1   ;;  %v797_v37 = vlaneseq  ;;  %vm518_vm0 = vcmask 130048  }
  0x18   : > { %2202 = vset.pattern.permute.xlu1 %v2315_v0  ;;  %2201 = vset.pattern.permute.xlu0 %v2315_v0  ;;  %v2317_v41 = vmov 0.0  }
  0x19   : > { %s1897_s13 = sshll.u32 %s2441_s12, 7  ;;  %s1899_s23 = sshll.u32 %s2441_s12, 4  ;;  %v2514_v38 = vand.u32 127, %v797_v37 }
  0x1a   : > { %s2449_s16 = scalar_lea.vmem %s2811_s0, %s1897_s13  ;;  %s508_s28 = scalar_lea.vmem %s2798_s3, %s1899_s23 }
  0x1b   : > { %v541_v1 = vld [vmem:[%s2449_s16 + $0x10] sm:$0xff]  ;;  %v539_v2 = vld [vmem:[%s2449_s16] sm:$0xff]  ;;  %v542_v3 = vld [vmem:[%s2449_s16 + $0x18] sm:$0xff]  ;;  %s2486_s24 = scalar_lea.vmem %s2797_s2, %s1897_s13  ;;  %s2509_s26 = scalar_lea.vmem %s2799_s4, %s1899_s23 }
  0x1c   : > { %806 = vperm.xlu1 %2202, %v541_v1   ;;  %800 = vperm.xlu0 %2201, %v539_v2   ;;  %v540_v4 = vld [vmem:[%s2449_s16 + $0x8] sm:$0xff]  ;;  %v543_v6 = vld [vmem:[%s2449_s16 + $0x20] sm:$0xff]  ;;  %v546_v7 = vld [vmem:[%s2449_s16 + $0x38] sm:$0xff]  ;;  %s493_s23 = scalar_lea.vmem %s2812_s1, %s2441_s12  ;;  %s2319_s13 = smov [#allocation2]  }
  0x1d   : > { %v544_v5 = vld [vmem:[%s2449_s16 + $0x28] sm:$0xff]  ;;  %v545_v8 = vld [vmem:[%s2449_s16 + $0x30] sm:$0xff]  ;;  %v2468_v10 = vld [vmem:[%s508_s28] sm:$0xff] }
  0x1e   : > { %v2465_v9 = vld [vmem:[%s508_s28 + $0x8] sm:$0xff]  ;;  %v547_v12 = vld [vmem:[%s2449_s16 + $0x40] sm:$0xff]  ;;  %v550_v13 = vld [vmem:[%s2449_s16 + $0x58] sm:$0xff]  ;;  %s475_s28 = sand.u32 1, %s2297_s18  }
  0x1f   : > { %1990 = vmatprep.subr.mxu0 %v2465_v9  ;;  %v548_v11 = vld [vmem:[%s2449_s16 + $0x48] sm:$0xff]  ;;  %v549_v14 = vld [vmem:[%s2449_s16 + $0x50] sm:$0xff]  ;;  %v551_v16 = vld [vmem:[%s2449_s16 + $0x60] sm:$0xff]  ;;  %s1824_s14 = sshll.u32 %s475_s28, 4 }
  0x20   : > { %809 = vperm.xlu1 %2202, %v542_v3   ;;  %803 = vperm.xlu0 %2201, %v540_v4   ;;  %v552_v15 = vld [vmem:[%s2449_s16 + $0x68] sm:$0xff]  ;;  %v554_v17 = vld [vmem:[%s2449_s16 + $0x78] sm:$0xff]  ;;  %v553_v18 = vld [vmem:[%s2449_s16 + $0x70] sm:$0xff]  ;;  %s2707_s15 = scalar_lea.vmem [#allocation2], %s1824_s14  ;;  %s1901_s16 = sshll.u32 %s2305_s20, 8 }
  0x21   : > { %1991 = vmatpush3.msra.mxu0 %v2465_v9  ;;  %v523_v19 = vld [vmem:[%s2486_s24] sm:$0xff]  ;;  %v524_v21 = vld [vmem:[%s2486_s24 + $0x8] sm:$0xff]  ;;  %v525_v22 = vld [vmem:[%s2486_s24 + $0x10] sm:$0xff]  ;;  %520 = vst.msk [vmem:[%s2707_s15 + $0x8] sm:$0xff] %vm518_vm0, %v2317_v41  ;;  %s2750_s20 = scalar_lea.sflag [#allocation3], %s475_s28 }
  0x22   : > { %1992 = vmatprep.subr.mxu0 %v2468_v10  ;;  %v526_v23 = vld [vmem:[%s2486_s24 + $0x18] sm:$0xff]  ;;  %v527_v24 = vld [vmem:[%s2486_s24 + $0x20] sm:$0xff]  ;;  %v528_v25 = vld [vmem:[%s2486_s24 + $0x28] sm:$0xff]  ;;  %519 = vst.msk [vmem:[%s2707_s15] sm:$0xff] %vm518_vm0, %v2317_v41 }
  0x23   : > { %1993 = vmatpush3.msra.mxu0 %v2468_v10  ;;  %v529_v26 = vld [vmem:[%s2486_s24 + $0x30] sm:$0xff]  ;;  %v530_v27 = vld [vmem:[%s2486_s24 + $0x38] sm:$0xff]  ;;  %v531_v28 = vld [vmem:[%s2486_s24 + $0x40] sm:$0xff] }
  0x24   : > { %815 = vperm.xlu1 %2202, %v544_v5   ;;  %812 = vperm.xlu0 %2201, %v543_v6   ;;  %v532_v29 = vld [vmem:[%s2486_s24 + $0x48] sm:$0xff]  ;;  %v533_v30 = vld [vmem:[%s2486_s24 + $0x50] sm:$0xff]  ;;  %v534_v31 = vld [vmem:[%s2486_s24 + $0x58] sm:$0xff] }
  0x25   : > { %v535_v32 = vld [vmem:[%s2486_s24 + $0x60] sm:$0xff]  ;;  %v536_v33 = vld [vmem:[%s2486_s24 + $0x68] sm:$0xff]  ;;  %v537_v34 = vld [vmem:[%s2486_s24 + $0x70] sm:$0xff] }
  0x26   : > { %v538_v35 = vld [vmem:[%s2486_s24 + $0x78] sm:$0xff]  ;;  %v1560_v36 = vld [vmem:[%s2509_s26] sm:$0xff] }
  0x28   : > { %821 = vperm.xlu1 %2202, %v546_v7   ;;  %818 = vperm.xlu0 %2201, %v545_v8   ;;  %v1089_v8 = vld [vmem:[%s2804_s9] sm:$0xff] }
  0x29   : > { %2018 = vmatprep.subr.mxu1 %v1089_v8 }
  0x2a   : > { %2019 = vmatpush3.msra.mxu1 %v1089_v8 }
  0x2c   : > { %827 = vperm.xlu1 %2202, %v548_v11   ;;  %824 = vperm.xlu0 %2201, %v547_v12   ;;  %v1315_v11 = vld [vmem:[%s2805_s10 + $0x78] sm:$0xff] }
  0x2d   : > { %2044 = vmatprep.subr.mxu1 %v1315_v11 }
  0x30   : > { %833 = vperm.xlu1 %2202, %v550_v13   ;;  %830 = vperm.xlu0 %2201, %v549_v14   ;;  %v1314_v14 = vld [vmem:[%s2805_s10 + $0x70] sm:$0xff] }
  0x34   : > { %839 = vperm.xlu1 %2202, %v552_v15   ;;  %836 = vperm.xlu0 %2201, %v551_v16   ;;  %v1313_v16 = vld [vmem:[%s2805_s10 + $0x68] sm:$0xff] }
  0x38   : > { %845 = vperm.xlu1 %2202, %v554_v17   ;;  %842 = vperm.xlu0 %2201, %v553_v18   ;;  %v1312_v18 = vld [vmem:[%s2805_s10 + $0x60] sm:$0xff] }
  0x3c   : > { %2203 = vset.pattern.permute.xlu1 %v2316_v20  ;;  %559 = vperm.xlu0 %2201, %v523_v19   ;;  %v1311_v20 = vld [vmem:[%s2805_s10 + $0x58] sm:$0xff] }
  0x3d   : > { %659 = vperm.xlu1 %2203, %v523_v19  }
  0x40   : > { %564 = vperm.xlu0 %2201, %v524_v21  }
  0x41   : > { %663 = vperm.xlu1 %2203, %v524_v21  }
  0x44   : > { %569 = vperm.xlu0 %2201, %v525_v22  }
  0x45   : > { %667 = vperm.xlu1 %2203, %v525_v22   ;;  %v1310_v22 = vld [vmem:[%s2805_s10 + $0x50] sm:$0xff] }
  0x48   : > { %574 = vperm.xlu0 %2201, %v526_v23  }
  0x49   : > { %671 = vperm.xlu1 %2203, %v526_v23  }
  0x4c   : > { %579 = vperm.xlu0 %2201, %v527_v24  }
  0x4d   : > { %675 = vperm.xlu1 %2203, %v527_v24   ;;  %v1309_v24 = vld [vmem:[%s2805_s10 + $0x48] sm:$0xff] }
  0x50   : > { %584 = vperm.xlu0 %2201, %v528_v25  }
  0x51   : > { %679 = vperm.xlu1 %2203, %v528_v25  }
  0x54   : > { %589 = vperm.xlu0 %2201, %v529_v26  }
  0x55   : > { %683 = vperm.xlu1 %2203, %v529_v26   ;;  %v1308_v26 = vld [vmem:[%s2805_s10 + $0x40] sm:$0xff] }
  0x58   : > { %594 = vperm.xlu0 %2201, %v530_v27  }
  0x59   : > { %687 = vperm.xlu1 %2203, %v530_v27  }
  0x5c   : > { %599 = vperm.xlu0 %2201, %v531_v28  }
  0x5d   : > { %691 = vperm.xlu1 %2203, %v531_v28   ;;  %v1307_v28 = vld [vmem:[%s2805_s10 + $0x38] sm:$0xff] }
  0x60   : > { %604 = vperm.xlu0 %2201, %v532_v29  }
  0x61   : > { %695 = vperm.xlu1 %2203, %v532_v29  }
  0x64   : > { %609 = vperm.xlu0 %2201, %v533_v30  }
  0x65   : > { %699 = vperm.xlu1 %2203, %v533_v30   ;;  %v1306_v30 = vld [vmem:[%s2805_s10 + $0x30] sm:$0xff] }
  0x68   : > { %614 = vperm.xlu0 %2201, %v534_v31  }
  0x69   : > { %703 = vperm.xlu1 %2203, %v534_v31  }
  0x6c   : > { %619 = vperm.xlu0 %2201, %v535_v32  }
  0x6d   : > { %707 = vperm.xlu1 %2203, %v535_v32   ;;  %v1305_v32 = vld [vmem:[%s2805_s10 + $0x28] sm:$0xff] }
  0x70   : > { %624 = vperm.xlu0 %2201, %v536_v33  }
  0x71   : > { %711 = vperm.xlu1 %2203, %v536_v33  }
  0x74   : > { %629 = vperm.xlu0 %2201, %v537_v34  }
  0x75   : > { %715 = vperm.xlu1 %2203, %v537_v34   ;;  %v1304_v34 = vld [vmem:[%s2805_s10 + $0x20] sm:$0xff] }
  0x78   : > { %634 = vperm.xlu0 %2201, %v538_v35  }
  0x79   : > { %719 = vperm.xlu1 %2203, %v538_v35  }
  0x7c   : > { %1564 = vperm.xlu0 %2201, %v1560_v36   ;;  %v1303_v36 = vld [vmem:[%s2805_s10 + $0x18] sm:$0xff] }
  0x7d   : > { %2204 = vset.pattern.permute.xlu1 %v2315_v0 }
  0x97   : > { %v807_v39 = vpop.permute.xlu1 %806  ;;  %v801_v40 = vpop.permute.xlu0 %800 }
  0x98   : > { %vm847_vm1 = vcmp.eq.s32.totalorder %v801_v40, %v2514_v38  ;;  %vm849_vm2 = vcmp.eq.s32.totalorder %v807_v39, %v2514_v38 }
  0x99   : > { %v1836_v42 = vsel %vm847_vm1, 1.0, %v2317_v41  ;;  %v1838_v45 = vsel %vm849_vm2, 1.0, %v2317_v41  ;;  %vm1090_vm2 = vcmask 64512  }
  0x9a   : > { %1994 = vmatprep.mubr.msk.f32.mxu0 %vm518_vm0, %v1836_v42  ;;  %v1302_v42 = vld [vmem:[%s2805_s10 + $0x10] sm:$0xff] }
  0x9b   : > { %v810_v43 = vpop.permute.xlu1 %809  ;;  %v804_v44 = vpop.permute.xlu0 %803 }
  0x9c   : > { %vm848_vm3 = vcmp.eq.s32.totalorder %v804_v44, %v2514_v38  ;;  %vm850_vm4 = vcmp.eq.s32.totalorder %v810_v43, %v2514_v38  ;;  %v1301_v43 = vld [vmem:[%s2805_s10 + $0x8] sm:$0xff]  ;;  %v1300_v44 = vld [vmem:[%s2805_s10] sm:$0xff] }
  0x9d   : > { %v1837_v46 = vsel %vm848_vm3, 1.0, %v2317_v41  ;;  %v1839_v49 = vsel %vm850_vm4, 1.0, %v2317_v41 }
  0x9e   : > { %1995 = vmatmul.mubr.msk.f32.vlgmr.msra.gmra.mxu0 %vm518_vm0, %v1837_v46 }
  0x9f   : > { %v816_v47 = vpop.permute.xlu1 %815  ;;  %1997 = vmatprep.mubr.msk.f32.mxu0 %vm518_vm0, %v1838_v45  ;;  %v813_v48 = vpop.permute.xlu0 %812 }
  0xa0   : > { %vm851_vm5 = vcmp.eq.s32.totalorder %v813_v48, %v2514_v38  ;;  %vm852_vm6 = vcmp.eq.s32.totalorder %v816_v47, %v2514_v38 }
  0xa1   : > { %v1840_v50 = vsel %vm851_vm5, 1.0, %v2317_v41  ;;  %v1841_v53 = vsel %vm852_vm6, 1.0, %v2317_v41 }
  0xa2   : > { %1998 = vmatmul.mubr.msk.f32.gmra.mxu0 %vm518_vm0, %v1839_v49 }
  0xa3   : > { %v822_v51 = vpop.permute.xlu1 %821  ;;  %2000 = vmatprep.mubr.msk.f32.mxu0 %vm518_vm0, %v1840_v50  ;;  %v819_v52 = vpop.permute.xlu0 %818 }
  0xa4   : > { %vm853_vm7 = vcmp.eq.s32.totalorder %v819_v52, %v2514_v38  ;;  %vm854_vm8 = vcmp.eq.s32.totalorder %v822_v51, %v2514_v38 }
  0xa5   : > { %v1842_v54 = vsel %vm853_vm7, 1.0, %v2317_v41  ;;  %v1843_v57 = vsel %vm854_vm8, 1.0, %v2317_v41 }
  0xa6   : > { %2001 = vmatmul.mubr.msk.f32.gmra.mxu0 %vm518_vm0, %v1841_v53 }
  0xa7   : > { %v828_v55 = vpop.permute.xlu1 %827  ;;  %2003 = vmatprep.mubr.msk.f32.mxu0 %vm518_vm0, %v1842_v54  ;;  %v825_v56 = vpop.permute.xlu0 %824 }
  0xa8   : > { %vm855_vm9 = vcmp.eq.s32.totalorder %v825_v56, %v2514_v38  ;;  %vm856_vm10 = vcmp.eq.s32.totalorder %v828_v55, %v2514_v38 }
  0xa9   : > { %v1844_v58 = vsel %vm855_vm9, 1.0, %v2317_v41  ;;  %v1845_v61 = vsel %vm856_vm10, 1.0, %v2317_v41 }
  0xaa   : > { %2004 = vmatmul.mubr.msk.f32.gmra.mxu0 %vm518_vm0, %v1843_v57 }
  0xab   : > { %v834_v59 = vpop.permute.xlu1 %833  ;;  %2006 = vmatprep.mubr.msk.f32.mxu0 %vm518_vm0, %v1844_v58  ;;  %v831_v60 = vpop.permute.xlu0 %830 }
  0xac   : > { %vm857_vm11 = vcmp.eq.s32.totalorder %v831_v60, %v2514_v38  ;;  %vm858_vm12 = vcmp.eq.s32.totalorder %v834_v59, %v2514_v38 }
  0xad   : > { %v1846_v62 = vsel %vm857_vm11, 1.0, %v2317_v41  ;;  %v1847_v1 = vsel %vm858_vm12, 1.0, %v2317_v41 }
  0xae   : > { %2007 = vmatmul.mubr.msk.f32.gmra.mxu0 %vm518_vm0, %v1845_v61 }
  0xaf   : > { %v840_v63 = vpop.permute.xlu1 %839  ;;  %2009 = vmatprep.mubr.msk.f32.mxu0 %vm518_vm0, %v1846_v62  ;;  %v837_v0 = vpop.permute.xlu0 %836 }
  0xb0   : > { %vm859_vm13 = vcmp.eq.s32.totalorder %v837_v0, %v2514_v38  ;;  %vm860_vm14 = vcmp.eq.s32.totalorder %v840_v63, %v2514_v38 }
  0xb1   : > { %v1848_v2 = vsel %vm859_vm13, 1.0, %v2317_v41  ;;  %v1849_v5 = vsel %vm860_vm14, 1.0, %v2317_v41 }
  0xb2   : > { %2010 = vmatmul.mubr.msk.f32.gmra.mxu0 %vm518_vm0, %v1847_v1  ;;  %v2634_v1 = vld [vmem:[%s2800_s5] ss:$0 sm:$0xff] }
  0xb3   : > { %v846_v3 = vpop.permute.xlu1 %845  ;;  %2012 = vmatprep.mubr.msk.f32.mxu0 %vm518_vm0, %v1848_v2  ;;  %v843_v4 = vpop.permute.xlu0 %842  ;;  %v2639_v2 = vld [vmem:[%s2800_s5 + $0x1] ss:$0 sm:$0xff] }
  0xb4   : > { %vm861_vm15 = vcmp.eq.s32.totalorder %v843_v4, %v2514_v38  ;;  %vm862_vm1 = vcmp.eq.s32.totalorder %v846_v3, %v2514_v38 }
  0xb5   : > { %v1850_v6 = vsel %vm861_vm15, 1.0, %v2317_v41  ;;  %v1851_v7 = vsel %vm862_vm1, 1.0, %v2317_v41  ;;  %v1574_v41 = vld [vmem:[%s2802_s7] sm:$0xff] }
  0xb6   : > { %2013 = vmatmul.mubr.msk.f32.gmra.mxu0 %vm518_vm0, %v1849_v5 }
  0xb7   : > { %2015 = vmatprep.mubr.msk.f32.mxu0 %vm518_vm0, %v1850_v6  ;;  %v560_v45 = vpop.permute.xlu0 %559 }
  0xb8   : > { %v660_v46 = vpop.permute.xlu1 %659  ;;  %v641_v5 = vmul.f32 %v2634_v1, %v560_v45 }
  0xb9   : > { %v726_v6 = vmul.f32 %v2639_v2, %v660_v46 }
  0xba   : > { %2016 = vmatmul.mubr.msk.f32.gmra.mxu0 %vm518_vm0, %v1851_v7 }
  0xbb   : > { %v565_v47 = vpop.permute.xlu0 %564 }
  0xbc   : > { %v664_v48 = vpop.permute.xlu1 %663  ;;  %v642_v7 = vmul.f32 %v2634_v1, %v565_v47 }
  0xbd   : > { %v727_v8 = vmul.f32 %v2639_v2, %v664_v48 }
  0xbf   : > { %v570_v49 = vpop.permute.xlu0 %569 }
  0xc0   : > { %v668_v50 = vpop.permute.xlu1 %667 }
  0xc3   : > { %v575_v51 = vpop.permute.xlu0 %574 }
  0xc4   : > { %v672_v52 = vpop.permute.xlu1 %671 }
  0xc7   : > { %v580_v53 = vpop.permute.xlu0 %579 }
  0xc8   : > { %v676_v54 = vpop.permute.xlu1 %675 }
  0xcb   : > { %v585_v55 = vpop.permute.xlu0 %584 }
  0xcc   : > { %v680_v56 = vpop.permute.xlu1 %679 }
  0xcf   : > { %v590_v57 = vpop.permute.xlu0 %589 }
  0xd0   : > { %v684_v58 = vpop.permute.xlu1 %683 }
  0xd3   : > { %v595_v59 = vpop.permute.xlu0 %594 }
  0xd4   : > { %v688_v60 = vpop.permute.xlu1 %687 }
  0xd7   : > { %v600_v61 = vpop.permute.xlu0 %599 }
  0xd8   : > { %v692_v62 = vpop.permute.xlu1 %691 }
  0xdb   : > { %v605_v63 = vpop.permute.xlu0 %604 }
  0xdc   : > { %v696_v0 = vpop.permute.xlu1 %695 }
  0xdd   : > { %v735_v45 = vmul.f32 %v2639_v2, %v696_v0 }
  0xdf   : > { %v610_v3 = vpop.permute.xlu0 %609 }
  0xe0   : > { %v700_v4 = vpop.permute.xlu1 %699 }
 0x15e   : > { %v1996_v12 = vpop.f32.mrf.mxu0 }
 0x160   : > { %v1010_v13 = vpop.f32.mrf.mxu0 }
 0x161   : > { %2020 = vmatprep.mubr.msk.f32.mxu1 %vm1090_vm2, %v1010_v13  ;;  %v704_v13 = vpop.permute.xlu1 %703 }
 0x162   : > { %v1999_v15 = vpop.f32.mrf.mxu0  ;;  %2021 = vmatmul.mubr.msk.f32.vlgmr.msra.gmra.mxu1 %vm1090_vm2, %v1996_v12  ;;  %v615_v12 = vpop.permute.xlu0 %614 }
 0x163   : > { %2045 = vmatpush3.msra.mxu1 %v1315_v11  ;;  %v742_v11 = vadd.f32 %v726_v6, %v641_v5 }
 0x164   : > { %v1020_v17 = vpop.f32.mrf.mxu0  ;;  %2046 = vmatprep.subr.mxu1 %v1314_v14 }
 0x165   : > { %2023 = vmatprep.mubr.msk.f32.mxu1 %vm1090_vm2, %v1020_v17  ;;  %2047 = vmatpush3.msra.mxu1 %v1314_v14  ;;  %v2648_v14 = vld [vmem:[%s2801_s6] ss:$0 sm:$0xff]  ;;  %v728_v17 = vmul.f32 %v2639_v2, %v668_v50 }
 0x166   : > { %v2002_v19 = vpop.f32.mrf.mxu0  ;;  %2024 = vmatmul.mubr.msk.f32.gmra.mxu1 %vm1090_vm2, %v1999_v15  ;;  %2048 = vmatprep.subr.mxu1 %v1313_v16  ;;  %v743_v15 = vadd.f32 %v727_v8, %v642_v7 }
 0x167   : > { %2049 = vmatpush3.msra.mxu1 %v1313_v16  ;;  %v643_v16 = vmul.f32 %v2634_v1, %v570_v49 }
 0x168   : > { %v1030_v21 = vpop.f32.mrf.mxu0  ;;  %2050 = vmatprep.subr.mxu1 %v1312_v18 }
 0x169   : > { %2026 = vmatprep.mubr.msk.f32.mxu1 %vm1090_vm2, %v1030_v21  ;;  %2051 = vmatpush3.msra.mxu1 %v1312_v18  ;;  %v644_v18 = vmul.f32 %v2634_v1, %v575_v51  ;;  %v766_v21 = vadd.f32 %v2648_v14, %v743_v15 }
 0x16a   : > { %v2005_v23 = vpop.f32.mrf.mxu0  ;;  %2027 = vmatmul.mubr.msk.f32.gmra.mxu1 %vm1090_vm2, %v2002_v19  ;;  %2052 = vmatprep.subr.mxu1 %v1311_v20  ;;  %v729_v19 = vmul.f32 %v2639_v2, %v672_v52 }
 0x16b   : > { %2053 = vmatpush3.msra.mxu1 %v1311_v20  ;;  %v765_v20 = vadd.f32 %v2648_v14, %v742_v11 }
 0x16c   : > { %v1040_v25 = vpop.f32.mrf.mxu0  ;;  %2054 = vmatprep.subr.mxu1 %v1310_v22 }
 0x16d   : > { %2029 = vmatprep.mubr.msk.f32.mxu1 %vm1090_vm2, %v1040_v25  ;;  %2055 = vmatpush3.msra.mxu1 %v1310_v22  ;;  %v744_v22 = vadd.f32 %v728_v17, %v643_v16  ;;  %v620_v25 = vpop.permute.xlu0 %619  ;;  %2205 = vtanh.f32 %v765_v20 }
 0x16e   : > { %v2008_v27 = vpop.f32.mrf.mxu0  ;;  %2030 = vmatmul.mubr.msk.f32.gmra.mxu1 %vm1090_vm2, %v2005_v23  ;;  %2056 = vmatprep.subr.mxu1 %v1309_v24  ;;  %v645_v23 = vmul.f32 %v2634_v1, %v580_v53  ;;  %2207 = vtanh.f32 %v766_v21  ;;  %v651_v53 = vmul.f32 %v2634_v1, %v610_v3 }
 0x16f   : > { %2057 = vmatpush3.msra.mxu1 %v1309_v24  ;;  %v730_v24 = vmul.f32 %v2639_v2, %v676_v54  ;;  %v736_v54 = vmul.f32 %v2639_v2, %v700_v4  ;;  %v653_v4 = vmul.f32 %v2634_v1, %v620_v25 }
 0x170   : > { %v1050_v29 = vpop.f32.mrf.mxu0  ;;  %2058 = vmatprep.subr.mxu1 %v1308_v26 }
 0x171   : > { %2032 = vmatprep.mubr.msk.f32.mxu1 %vm1090_vm2, %v1050_v29  ;;  %2059 = vmatpush3.msra.mxu1 %v1308_v26  ;;  %v708_v26 = vpop.permute.xlu1 %707  ;;  %v731_v29 = vmul.f32 %v2639_v2, %v680_v56  ;;  %v752_v3 = vadd.f32 %v736_v54, %v651_v53 }
 0x172   : > { %v2011_v31 = vpop.f32.mrf.mxu0  ;;  %2033 = vmatmul.mubr.msk.f32.gmra.mxu1 %vm1090_vm2, %v2008_v27  ;;  %2060 = vmatprep.subr.mxu1 %v1307_v28  ;;  %v745_v27 = vadd.f32 %v729_v19, %v644_v18  ;;  %v738_v5 = vmul.f32 %v2639_v2, %v708_v26 }
 0x173   : > { %2061 = vmatpush3.msra.mxu1 %v1307_v28  ;;  %v646_v28 = vmul.f32 %v2634_v1, %v585_v55  ;;  %v775_v18 = vadd.f32 %v2648_v14, %v752_v3 }
 0x174   : > { %v1060_v33 = vpop.f32.mrf.mxu0  ;;  %2062 = vmatprep.subr.mxu1 %v1306_v30  ;;  %v754_v19 = vadd.f32 %v738_v5, %v653_v4 }
 0x175   : > { %2035 = vmatprep.mubr.msk.f32.mxu1 %vm1090_vm2, %v1060_v33  ;;  %2063 = vmatpush3.msra.mxu1 %v1306_v30  ;;  %v767_v30 = vadd.f32 %v2648_v14, %v744_v22  ;;  %v732_v33 = vmul.f32 %v2639_v2, %v684_v58  ;;  %v652_v58 = vmul.f32 %v2634_v1, %v615_v12 }
 0x176   : > { %v2014_v35 = vpop.f32.mrf.mxu0  ;;  %2036 = vmatmul.mubr.msk.f32.gmra.mxu1 %vm1090_vm2, %v2011_v31  ;;  %2064 = vmatprep.subr.mxu1 %v1305_v32  ;;  %v746_v31 = vadd.f32 %v730_v24, %v645_v23 }
 0x177   : > { %2065 = vmatpush3.msra.mxu1 %v1305_v32  ;;  %v647_v32 = vmul.f32 %v2634_v1, %v590_v57  ;;  %2209 = vtanh.f32 %v767_v30 }
 0x178   : > { %v1070_v38 = vpop.f32.mrf.mxu0  ;;  %2066 = vmatprep.subr.mxu1 %v1304_v34  ;;  %v769_v46 = vadd.f32 %v2648_v14, %v746_v31 }
 0x179   : > { %2038 = vmatprep.mubr.msk.f32.mxu1 %vm1090_vm2, %v1070_v38  ;;  %2067 = vmatpush3.msra.mxu1 %v1304_v34  ;;  %v768_v34 = vadd.f32 %v2648_v14, %v745_v27  ;;  %v733_v38 = vmul.f32 %v2639_v2, %v688_v60  ;;  %v748_v47 = vadd.f32 %v732_v33, %v647_v32 }
 0x17a   : > { %v2017_v39 = vpop.f32.mrf.mxu0  ;;  %2039 = vmatmul.mubr.msk.f32.gmra.mxu1 %vm1090_vm2, %v2014_v35  ;;  %2068 = vmatprep.subr.mxu1 %v1303_v36  ;;  %v747_v35 = vadd.f32 %v731_v29, %v646_v28  ;;  %v777_v32 = vadd.f32 %v2648_v14, %v754_v19 }
 0x17b   : > { %2069 = vmatpush3.msra.mxu1 %v1303_v36  ;;  %v648_v36 = vmul.f32 %v2634_v1, %v595_v59  ;;  %2211 = vtanh.f32 %v768_v34  ;;  %v771_v52 = vadd.f32 %v2648_v14, %v748_v47  ;;  %v737_v59 = vmul.f32 %v2639_v2, %v704_v13 }
 0x17c   : > { %v1080_v40 = vpop.f32.mrf.mxu0  ;;  %2070 = vmatprep.subr.mxu1 %v1302_v42  ;;  %v770_v48 = vadd.f32 %v2648_v14, %v747_v35  ;;  %2213 = vtanh.f32 %v769_v46 }
 0x17d   : > { %2041 = vmatprep.mubr.msk.f32.mxu1 %vm1090_vm2, %v1080_v40  ;;  %2071 = vmatpush3.msra.mxu1 %v1302_v42  ;;  %v734_v40 = vmul.f32 %v2639_v2, %v692_v62  ;;  %v625_v42 = vpop.permute.xlu0 %624  ;;  %v749_v49 = vadd.f32 %v733_v38, %v648_v36  ;;  %v753_v6 = vadd.f32 %v737_v59, %v652_v58 }
 0x17e   : > { %2042 = vmatmul.mubr.msk.f32.gmra.mxu1 %vm1090_vm2, %v2017_v39  ;;  %2072 = vmatprep.subr.mxu1 %v1301_v43  ;;  %v649_v39 = vmul.f32 %v2634_v1, %v600_v61  ;;  %2215 = vtanh.f32 %v770_v48  ;;  %v2206_v61 = vpop.eup %2205  ;;  %v654_v7 = vmul.f32 %v2634_v1, %v625_v42 }
 0x17f   : > { %2073 = vmatpush3.msra.mxu1 %v1301_v43  ;;  %v712_v43 = vpop.permute.xlu1 %711  ;;  %v772_v57 = vadd.f32 %v2648_v14, %v749_v49  ;;  %v2208_v0 = vpop.eup %2207  ;;  %2217 = vtanh.f32 %v771_v52  ;;  %v776_v23 = vadd.f32 %v2648_v14, %v753_v6 }
 0x180   : > { %2074 = vmatprep.subr.mxu1 %v1300_v44  ;;  %v750_v50 = vadd.f32 %v734_v40, %v649_v39  ;;  %v739_v8 = vmul.f32 %v2639_v2, %v712_v43 }
 0x181   : > { %2075 = vmatpush3.msra.mxu1 %v1300_v44  ;;  %v650_v44 = vmul.f32 %v2634_v1, %v605_v63  ;;  %v630_v55 = vpop.permute.xlu0 %629  ;;  %2219 = vtanh.f32 %v772_v57 }
 0x182   : > { %v773_v60 = vadd.f32 %v2648_v14, %v750_v50  ;;  %v655_v20 = vmul.f32 %v2634_v1, %v630_v55  ;;  %v755_v24 = vadd.f32 %v739_v8, %v654_v7 }
 0x183   : > { %v751_v51 = vadd.f32 %v735_v45, %v650_v44  ;;  %v716_v56 = vpop.permute.xlu1 %715 }
 0x184   : > { %2221 = vtanh.f32 %v773_v60  ;;  %v740_v21 = vmul.f32 %v2639_v2, %v716_v56  ;;  %v2210_v22 = vpop.eup %2209  ;;  %v778_v35 = vadd.f32 %v2648_v14, %v755_v24 }
 0x185   : > { %v774_v62 = vadd.f32 %v2648_v14, %v751_v51  ;;  %v635_v12 = vpop.permute.xlu0 %634 }
 0x186   : > { %v656_v25 = vmul.f32 %v2634_v1, %v635_v12  ;;  %v756_v33 = vadd.f32 %v740_v21, %v655_v20  ;;  %v1462_v12 = vshrl.u32 %v797_v37, 7 }
 0x187   : > { %v720_v13 = vpop.permute.xlu1 %719  ;;  %2223 = vtanh.f32 %v774_v62 }
 0x188   : > { %v741_v26 = vmul.f32 %v2639_v2, %v720_v13  ;;  %v2212_v28 = vpop.eup %2211  ;;  %2225 = vtanh.f32 %v775_v18  ;;  %v779_v42 = vadd.f32 %v2648_v14, %v756_v33  ;;  %v2699_v13 = vld [vmem:[%s493_s23] ss:$0 sm:$0xff]  ;;  %v1475_v33 = vld [vmem:[%s2707_s15 + $0x8] sm:$0xff]  ;;  %s1689_s23 = sshll.u32 %s2707_s15, 4  ;;  %s2742_s23 = int_to_ptr.vmem [resolvable:$true] %s1689_s23 }
 0x189   : > { %v2214_v34 = vpop.eup %2213  ;;  %2227 = vtanh.f32 %v776_v23  ;;  %vm1468_vm3 = vcmp.eq.s32.totalorder %v2699_v13, %v1462_v12  ;;  %s2237_s24 = scalar_lea.vmem %s2742_s23, 256 }
 0x18a   : > { %v757_v36 = vadd.f32 %v741_v26, %v656_v25  ;;  %2229 = vtanh.f32 %v777_v32  ;;  %p2238_p12 = scmp.ne.s32.totalorder %s2742_s23, %s2237_s24 }
 0x18b   : > { %v2216_v1 = vpop.eup %2215  ;;  %2231 = vtanh.f32 %v778_v35  ;;  %v1474_v35 = vld [vmem:[%s2707_s15] sm:$0xff] }
 0x18c   : > { %v2218_v43 = vpop.eup %2217  ;;  %v780_v44 = vadd.f32 %v2648_v14, %v757_v36  ;;  %2233 = vtanh.f32 %v779_v42  ;;  %v1565_v42 = vpop.permute.xlu0 %1564  ;;  %p2239_p13 = pnand %p2238_p12, %p2422_p4 }
 0x18e   : > { %v2220_v46 = vpop.eup %2219  ;;  %2235 = vtanh.f32 %v780_v44  ;;  %p2240_p0 = pneg %p2239_p13 }
 0x191   : > { %v2222_v48 = vpop.eup %2221 }
 0x194   : > { %v2224_v51 = vpop.eup %2223 }
 0x195   : > { %v2226_v56 = vpop.eup %2225 }
 0x196   : > { %v2228_v14 = vpop.eup %2227 }
 0x222   : > { %v2022_v63 = vpop.f32.mrf.mxu1 }
 0x223   : > { %v1285_v16 = vmul.f32 %v2208_v0, %v2022_v63 }
 0x224   : > { %v1205_v11 = vpop.f32.mrf.mxu1 }
 0x225   : > { %v1284_v15 = vmul.f32 %v2206_v61, %v1205_v11  ;;  %v2230_v61 = vpop.eup %2229 }
 0x226   : > { %v2025_v17 = vpop.f32.mrf.mxu1  ;;  %v2232_v63 = vpop.eup %2231 }
 0x227   : > { %2076 = vmatprep.mubr.f32.mxu1 %v1284_v15  ;;  %v1287_v30 = vmul.f32 %v2212_v28, %v2025_v17  ;;  %v2234_v5 = vpop.eup %2233  ;;  %v1463_v15 = vadd.s32 8, %v1462_v12  ;;  %v1561_v17 = vld [vmem:[%s2509_s26 + $0x8] sm:$0xff]  ;;  %s2740_s26 = scalar_lea.hbm %s2806_s11, %s1901_s16  ;;  %s2241_s16 = sshll.u32 %s2319_s13, 4  ;;  %s2242_s16 = int_to_ptr.vmem [resolvable:$false] %s2241_s16 }
 0x228   : > { %v1215_v27 = vpop.f32.mrf.mxu1  ;;  %2077 = vmatmul.mubr.f32.vlgmr.msra.gmra.mxu1 %v1285_v16  ;;  %v2236_v7 = vpop.eup %2235  ;;  %v2318_v16 = vmov 1.0   ;;  %1569 = vperm.xlu1 %2204, %v1561_v17   ;;  %s2243_s14 = scalar_lea.vmem %s2242_s16, 512  ;;  %p2244_p1 = scmp.lt.s32.totalorder %s2742_s23, %s2242_s16 }
 0x229   : > { %v1286_v29 = vmul.f32 %v2210_v22, %v1215_v27  ;;  %vm1469_vm4 = vcmp.eq.s32.totalorder %v2699_v13, %v1463_v15  ;;  %2132 = vmatprep.mubr.msk.f32.mxu0 %vm1468_vm3, %v2318_v16  ;;  %p2245_p2 = scmp.lt.s32.totalorder %s2243_s14, %s2237_s24 }
 0x22a   : > { %v2028_v31 = vpop.f32.mrf.mxu1 }
 0x22b   : > { %2079 = vmatprep.mubr.f32.mxu1 %v1286_v29  ;;  %v1289_v39 = vmul.f32 %v2216_v1, %v2028_v31  ;;  %p2246_p3 = por %p2245_p2, %p2244_p1 }
 0x22c   : > { %v1225_v38 = vpop.f32.mrf.mxu1  ;;  %2080 = vmatmul.mubr.f32.gmra.mxu1 %v1287_v30 }
 0x22d   : > { %v1288_v2 = vmul.f32 %v2214_v34, %v1225_v38  ;;  %p2247_p5 = pnand %p2246_p3, %p2240_p0 }
 0x22e   : > { %v2031_v40 = vpop.f32.mrf.mxu1 }
 0x22f   : > { %2082 = vmatprep.mubr.f32.mxu1 %v1288_v2  ;;  %v1291_v49 = vmul.f32 %v2220_v46, %v2031_v40 }
 0x230   : > { %v1235_v45 = vpop.f32.mrf.mxu1  ;;  %2083 = vmatmul.mubr.f32.gmra.mxu1 %v1289_v39 }
 0x231   : > { %v1290_v47 = vmul.f32 %v2218_v43, %v1235_v45 }
 0x232   : > { %v2034_v50 = vpop.f32.mrf.mxu1 }
 0x233   : > { %2085 = vmatprep.mubr.f32.mxu1 %v1290_v47  ;;  %v1293_v54 = vmul.f32 %v2224_v51, %v2034_v50 }
 0x234   : > { %v1245_v52 = vpop.f32.mrf.mxu1  ;;  %2086 = vmatmul.mubr.f32.gmra.mxu1 %v1291_v49 }
 0x235   : > { %v1292_v53 = vmul.f32 %v2222_v48, %v1245_v52 }
 0x236   : > { %v2037_v55 = vpop.f32.mrf.mxu1 }
 0x237   : > { %2088 = vmatprep.mubr.f32.mxu1 %v1292_v53  ;;  %v1295_v59 = vmul.f32 %v2228_v14, %v2037_v55 }
 0x238   : > { %v1255_v57 = vpop.f32.mrf.mxu1  ;;  %2089 = vmatmul.mubr.f32.gmra.mxu1 %v1293_v54 }
 0x239   : > { %v1294_v58 = vmul.f32 %v2226_v56, %v1255_v57 }
 0x23a   : > { %v2040_v60 = vpop.f32.mrf.mxu1 }
 0x23b   : > { %2091 = vmatprep.mubr.f32.mxu1 %v1294_v58  ;;  %v1297_v3 = vmul.f32 %v2232_v63, %v2040_v60 }
 0x23c   : > { %v1265_v62 = vpop.f32.mrf.mxu1  ;;  %2092 = vmatmul.mubr.f32.gmra.mxu1 %v1295_v59 }
 0x23d   : > { %v1296_v0 = vmul.f32 %v2230_v61, %v1265_v62 }
 0x23e   : > { %v2043_v4 = vpop.f32.mrf.mxu1 }
 0x23f   : > { %2094 = vmatprep.mubr.f32.mxu1 %v1296_v0  ;;  %v1299_v11 = vmul.f32 %v2236_v7, %v2043_v4 }
 0x240   : > { %v1275_v6 = vpop.f32.mrf.mxu1  ;;  %2095 = vmatmul.mubr.f32.gmra.mxu1 %v1297_v3 }
 0x241   : > { %v1298_v8 = vmul.f32 %v2234_v5, %v1275_v6 }
 0x243   : > { %2097 = vmatprep.mubr.f32.mxu1 %v1298_v8 }
 0x244   : > { %2098 = vmatmul.mubr.f32.gmra.mxu1 %v1299_v11 }
 0x2a3   : > { %v1570_v2 = vpop.permute.xlu1 %1569 }
 0x2e8   : > { %v2078_v37 = vpop.f32.mrf.mxu1 }
 0x2ea   : > { %v1382_v18 = vpop.f32.mrf.mxu1 }
 0x2ec   : > { %v2081_v19 = vpop.f32.mrf.mxu1 }
 0x2ee   : > { %v1392_v20 = vpop.f32.mrf.mxu1 }
 0x2f0   : > { %v2084_v21 = vpop.f32.mrf.mxu1 }
 0x2f2   : > { %v1402_v22 = vpop.f32.mrf.mxu1 }
 0x2f4   : > { %v2087_v23 = vpop.f32.mrf.mxu1 }
 0x2f6   : > { %v1412_v24 = vpop.f32.mrf.mxu1 }
 0x2f8   : > { %v2090_v25 = vpop.f32.mrf.mxu1 }
 0x2fa   : > { %v1422_v26 = vpop.f32.mrf.mxu1 }
 0x2fc   : > { %v2093_v27 = vpop.f32.mrf.mxu1 }
 0x2fe   : > { %v1432_v28 = vpop.f32.mrf.mxu1 }
 0x300   : > { %v2096_v29 = vpop.f32.mrf.mxu1 }
 0x302   : > { %v1442_v30 = vpop.f32.mrf.mxu1 }
 0x304   : > { %v2099_v31 = vpop.f32.mrf.mxu1 }
 0x305   : > { %2100 = vmatprep.subr.mxu0 %v2099_v31 }
 0x306   : > { %v1452_v32 = vpop.f32.mrf.mxu1  ;;  %2101 = vmatpush3.msra.mxu0 %v2099_v31 }
 0x307   : > { %2102 = vmatprep.subr.mxu0 %v1452_v32 }
 0x308   : > { %2103 = vmatpush3.msra.mxu0 %v1452_v32 }
 0x309   : > { %2104 = vmatprep.subr.mxu0 %v2096_v29 }
 0x30a   : > { %2105 = vmatpush3.msra.mxu0 %v2096_v29 }
 0x30b   : > { %2106 = vmatprep.subr.mxu0 %v1442_v30 }
 0x30c   : > { %2107 = vmatpush3.msra.mxu0 %v1442_v30 }
 0x30d   : > { %2108 = vmatprep.subr.mxu0 %v2093_v27 }
 0x30e   : > { %2109 = vmatpush3.msra.mxu0 %v2093_v27 }
 0x30f   : > { %2110 = vmatprep.subr.mxu0 %v1432_v28 }
 0x310   : > { %2111 = vmatpush3.msra.mxu0 %v1432_v28 }
 0x311   : > { %2112 = vmatprep.subr.mxu0 %v2090_v25 }
 0x312   : > { %2113 = vmatpush3.msra.mxu0 %v2090_v25 }
 0x313   : > { %2114 = vmatprep.subr.mxu0 %v1422_v26 }
 0x314   : > { %2115 = vmatpush3.msra.mxu0 %v1422_v26 }
 0x315   : > { %2116 = vmatprep.subr.mxu0 %v2087_v23 }
 0x316   : > { %2117 = vmatpush3.msra.mxu0 %v2087_v23 }
 0x317   : > { %2118 = vmatprep.subr.mxu0 %v1412_v24 }
 0x318   : > { %2119 = vmatpush3.msra.mxu0 %v1412_v24 }
 0x319   : > { %2120 = vmatprep.subr.mxu0 %v2084_v21 }
 0x31a   : > { %2121 = vmatpush3.msra.mxu0 %v2084_v21 }
 0x31b   : > { %2122 = vmatprep.subr.mxu0 %v1402_v22 }
 0x31c   : > { %2123 = vmatpush3.msra.mxu0 %v1402_v22 }
 0x31d   : > { %2124 = vmatprep.subr.mxu0 %v2081_v19 }
 0x31e   : > { %2125 = vmatpush3.msra.mxu0 %v2081_v19 }
 0x31f   : > { %2126 = vmatprep.subr.mxu0 %v1392_v20 }
 0x320   : > { %2127 = vmatpush3.msra.mxu0 %v1392_v20 }
 0x321   : > { %2128 = vmatprep.subr.mxu0 %v2078_v37 }
 0x322   : > { %2129 = vmatpush3.msra.mxu0 %v2078_v37 }
 0x323   : > { %2130 = vmatprep.subr.mxu0 %v1382_v18 }
 0x324   : > { %2131 = vmatpush3.msra.mxu0 %v1382_v18 }
 0x325   : > { %2133 = vmatmul.mubr.msk.f32.vlgmr.msra.gmra.mxu0 %vm1469_vm4, %v2318_v16  ;;  %2135 = vmatprep.subr.mxu0 %v1574_v41 }
 0x326   : > { %2136 = vmatpush3.msra.mxu0 %v1574_v41  ;;  %2137 = vmatprep.mubr.msk.f32.mxu0 %vm1090_vm2, %v2468_v10 }
 0x329   : > { %2138 = vmatmul.mubr.msk.f32.vlgmr.msra.gmra.mxu0 %vm1090_vm2, %v2465_v9  ;;  %v1891_v9 = vld [vmem:[%s2803_s8] ss:$0 sm:$0xff] }
 0x3e5   : > { %v2134_v34 = vpop.f32.mrf.mxu0 }
 0x3e6   : > { %v1552_v36 = vadd.f32 %v2134_v34, %v1475_v33 }
 0x3e7   : > { %v1542_v38 = vpop.f32.mrf.mxu0 }
 0x3e8   : > { %1554 = vst.msk [vmem:[%s2707_s15 + $0x8] sm:$0xff] %vm518_vm0, %v1552_v36  ;;  %v1551_v1 = vadd.f32 %v1542_v38, %v1474_v35 }
 0x3e9   : > { %v2139_v40 = vpop.f32.mrf.mxu0 }
 0x3ea   : > { %1553 = vst.msk [vmem:[%s2707_s15] sm:$0xff] %vm518_vm0, %v1551_v1 }
 0x3eb   : > { %v1647_v46 = vpop.f32.mrf.mxu0 }
 0x3ef   : > { %v1559_v39 = vld [vmem:[%s2707_s15 + $0x8] sm:$0xff] }
 0x3f0   : > { %v1573_v10 = vmul.f32 %v1570_v2, %v1559_v39 }
 0x3f1   : > { %v1558_v43 = vld [vmem:[%s2707_s15] sm:$0xff] }
 0x3f2   : > { %v1657_v44 = vadd.f32 %v2139_v40, %v1573_v10  ;;  %v1572_v45 = vmul.f32 %v1565_v42, %v1558_v43 }
 0x3f4   : > { %v1666_v47 = vadd.f32 %v1891_v9, %v1657_v44  ;;  %v1656_v48 = vadd.f32 %v1647_v46, %v1572_v45 }
 0x3f6   : > { %vm1668_vm5 = vcmp.ge.f32.partialorder %v1666_v47, 0.0  ;;  %v1670_v49 = vmul.f32 0.01, %v1666_v47  ;;  %v1665_v50 = vadd.f32 %v1891_v9, %v1656_v48 }
 0x3f8   : > { %v1672_v51 = vsel %vm1668_vm5, %v1666_v47, %v1670_v49  ;;  %vm1667_vm6 = vcmp.ge.f32.partialorder %v1665_v50, 0.0  ;;  %v1669_v52 = vmul.f32 0.01, %v1665_v50 }
 0x3f9   : > { %1674 = vst.msk [vmem:[%s2707_s15 + $0x8] sm:$0xff] %vm518_vm0, %v1672_v51 }
 0x3fa   : > { %v1671_v53 = vsel %vm1667_vm6, %v1665_v50, %v1669_v52 }
 0x3fb   : > { %1673 = vst.msk [vmem:[%s2707_s15] sm:$0xff] %vm518_vm0, %v1671_v53 }
 0x3fc   : > { %2250 = shalt.err (!%p2247_p5)
}
 0x3fd   : > { %s2251_s28 = scalar_lea.hbm %s2740_s26, 256  ;;  %s2255_s13 = scalar_lea.hbm %s2806_s11, 512 }
 0x3fe   : > { %p2252_p6 = scmp.ne.s32.totalorder %s2740_s26, %s2251_s28  ;;  %p2256_p10 = scmp.lt.s32.totalorder %s2740_s26, %s2806_s11 }
 0x3ff   : > { %p2257_p11 = scmp.lt.s32.totalorder %s2255_s13, %s2251_s28 }
 0x400   : > { %p2253_p7 = pnand %p2252_p6, %p2422_p4 }
 0x401   : > { %p2258_p12 = por %p2257_p11, %p2256_p10 }
 0x402   : > { %p2254_p9 = pneg %p2253_p7 }
 0x404   : > { %p2259_p13 = pnand %p2258_p12, %p2254_p9 }
 0x406   : > { %2262 = shalt.err (!%p2259_p13)
}
 0x407   : > { %s2320_s24 = smov 128   ;;  %s2321_s16 = smov 8  }
 0x408   : > { %2140 = dma.vmem_to_hbm [thread:$0]  (%p2422_p4), %s2742_s23, 256, %s2740_s26, %s2750_s20, %s2320_s24, %s2320_s24, %s2321_s16  }
 0x409 PF: > { %p2146_p0 = scmp.ge.s32.totalorder %s2313_s22, 2  ;;  %s1704_s14 = sand.u32 1, %s2293_s17  }
 0x40a   : > { %s1705_s0 = scalar_lea.sflag [#allocation3], %s1704_s14 }
 0x40b   : > { %p2143_p1 = pnand %p2146_p0, %p2429_p8 }
 0x40d   : > { %p2144_p2 = pneg %p2143_p1 }
 0x40f   : > { %2288 = dma.done.wait (%p2144_p2), %s1705_s0, 256  }
 0x410   : > { %2290 = vsyncadd (%p2144_p2), %s1705_s0, 4294967040  ;;  %s24_s22 = sadd.s32 1, %s2313_s22   ;;  %s2813_s17 = smov %s2297_s18 }
 0x411   : > { %p21_p3 = scmp.ge.s32.totalorder %s24_s22, 4   ;;  %s2814_s18 = smov %s2301_s19 }
 0x412   : > { %s2815_s19 = smov %s2435_s30  ;;  %s2816_s20 = smov %s2309_s21 }
 0x413   : > { %s2817_s21 = smov %s2819_s25  ;;  %23 = sbr.rel (!%p21_p3) target bundleno = 7 (0x7), region = 119 }
 0x418   :  { %1710 = vsyncpa [#allocation3], 1 }
 0x419   :  { %1712 = vsyncpa [#allocation3 + $0x1], 1 }

</bundles_post_ra>
